<compile_context>
chip_gen: v6e
topology: v6e:2x2x1
jax: 0.10.0
libtpu: 0.0.40
codegen_flags: <defaults>
</compile_context>

<pallas_src>
import jax
import jax.numpy as jnp
from jax import lax
from jax.experimental import pallas as pl
from jax.experimental.pallas import tpu as pltpu


def _round_up(x, m):
    return (x + m - 1) // m * m


def _pick_time_chunk(T, max_tt=128):
    """Largest chunk size <= max_tt that divides T; falls back to padding for awkward T."""
    best = 1
    for tt in range(1, min(T, max_tt) + 1):
        if T % tt == 0:
            best = tt
    if best < 8 and T > max_tt:
        best = max_tt  # accept a little trailing-time padding rather than tiny chunks
    return best


def rnn_recurrence_kernel(x0_ref,     # (Bp, Hp)        f32  xp[0] (layer-0 biases folded in)
                          xq_ref,     # (TT, Bp, 2*Hp)  f32  [xp[t+1] | b_ih1 + b_hh1]
                          w_ref,      # (2*Hp, 2*Hp)    bf16 block-stacked skewed weight
                          h_out_ref,  # (TT, Bp, Hp)    f32  h2[t] per step
                          carry_ref): # VMEM scratch (Bp, 2*Hp) f32: [h1[t] | h2[t-1]]
    Hp = h_out_ref.shape[-1]
    TT = xq_ref.shape[0]

    # Chunk-0 prologue: carry_0 = [h1[0] | h2[-1]] = [tanh(xp[0]) | 0].
    @pl.when(pl.program_id(0) == 0)
    def _():
        x0 = x0_ref[...]
        carry_ref[:, :Hp] = jnp.tanh(x0)
        carry_ref[:, Hp:] = jnp.zeros_like(x0)

    # Hoisted loop invariants: weight lives in vregs for the whole chunk.
    w = w_ref[...]

    def step(s, carry):
        # One fused MXU push per step:
        #   fused = [h1[t] @ W_hh0^T | h1[t] @ W_ih1^T + h2[t-1] @ W_hh1^T]
        fused = jnp.dot(carry.astype(jnp.bfloat16), w,
                        preferred_element_type=jnp.float32)
        # carry_{t+1} = [h1[t+1] | h2[t]] = tanh(fused + [xp[t+1] | b1])
        carry = jnp.tanh(fused + xq_ref[s])
        h_out_ref[s] = carry[:, Hp:]          # store h2[t] (vreg-aligned lane slice)
        return carry

    carry_ref[...] = lax.fori_loop(0, TT, step, carry_ref[...],
                                   unroll=min(TT, 8))


@jax.jit
def timeseries_rnn_pallas(x_bti, params):
    """x_bti: (B, T, I) float32 -> (B, T, O) float32 (nn.RNN(batch_first, 2 layers) + Linear)."""
    B, T, I = x_bti.shape
    H = params["w_hh0"].shape[0]

    Hp = _round_up(H, 128)        # lane padding
    Bp = _round_up(B, 8)          # sublane padding
    TT = _pick_time_chunk(T)      # chunk size that divides T (usually)
    Tp = _round_up(T, TT)
    n_chunks = Tp // TT

    x = jnp.transpose(x_bti, (1, 0, 2)).astype(jnp.float32)        # (T, B, I) time-major

    # --- Hoisted input projection (one big lane-dense matmul); layer-0 biases pre-summed.
    xp = jnp.einsum('tbi,hi->tbh', x, params["w_ih0"]) + (params["b_ih0"] + params["b_hh0"])

    # --- Prologue input: xp[0], padded to a full (8,128) tile.
    x0 = jnp.zeros((Bp, Hp), jnp.float32).at[:B, :H].set(xp[0])

    # --- Streamed per-step addend xq[t] = [xp[t+1] | b_ih1 + b_hh1]; the last (and any
    #     padded) step's left half is zero: h1[T] is never consumed.
    xq_left = jnp.zeros((Tp, Bp, Hp), jnp.float32).at[:T - 1, :B, :H].set(xp[1:])
    b1 = jnp.zeros((Hp,), jnp.float32).at[:H].set(params["b_ih1"] + params["b_hh1"])
    xq_right = jnp.broadcast_to(b1, (Tp, Bp, Hp))
    xq = jnp.concatenate([xq_left, xq_right], axis=-1)             # (Tp, Bp, 2*Hp)

    # --- Block-stacked skewed weight, bf16 MXU operands.  Padded rows/cols are zero, so
    #     padded hidden lanes provably stay zero through the recurrence (tanh(0) = 0).
    w_big = (jnp.zeros((2 * Hp, 2 * Hp), jnp.float32)
             .at[:H, :H].set(params["w_hh0"].T)
             .at[:H, Hp:Hp + H].set(params["w_ih1"].T)
             .at[Hp:Hp + H, Hp:Hp + H].set(params["w_hh1"].T)
             ).astype(jnp.bfloat16)

    h_out = pl.pallas_call(
        rnn_recurrence_kernel,
        out_shape=jax.ShapeDtypeStruct((Tp, Bp, Hp), jnp.float32),
        grid_spec=pltpu.PrefetchScalarGridSpec(
            num_scalar_prefetch=0,
            grid=(n_chunks,),
            in_specs=[
                pl.BlockSpec((Bp, Hp), lambda c: (0, 0)),             # xp[0] (prologue only)
                pl.BlockSpec((TT, Bp, 2 * Hp), lambda c: (c, 0, 0)),  # streamed activations
                pl.BlockSpec((2 * Hp, 2 * Hp), lambda c: (0, 0)),     # stationary weight
            ],
            out_specs=pl.BlockSpec((TT, Bp, Hp), lambda c: (c, 0, 0)),
            scratch_shapes=[pltpu.VMEM((Bp, 2 * Hp), jnp.float32)],   # carried [h1 | h2]
        ),
        compiler_params=pltpu.CompilerParams(
            dimension_semantics=("arbitrary",)),   # strictly serial recurrence
    )(x0, xq, w_big)

    # --- Hoisted FC head: one large matmul outside the serial loop.
    h2 = h_out[:T, :B, :H]
    out = jnp.einsum('tbh,oh->tbo', h2, params["w_fc"]) + params["b_fc"]
    return jnp.transpose(out, (1, 0, 2))                              # (B, T, O)


def timeseries_rnn_ref(x_bti, params):
    """Pure-JAX reference matching torch.nn.RNN(batch_first=True, num_layers=2) + Linear."""
    x = jnp.transpose(x_bti, (1, 0, 2))              # (T, B, I)
    B = x.shape[1]
    H = params["w_hh0"].shape[0]
    h0 = jnp.zeros((B, H), jnp.float32)

    def step(carry, x_t):
        h1, h2 = carry
        h1 = jnp.tanh(x_t @ params["w_ih0"].T + params["b_ih0"]
                      + h1 @ params["w_hh0"].T + params["b_hh0"])
        h2 = jnp.tanh(h1 @ params["w_ih1"].T + params["b_ih1"]
                      + h2 @ params["w_hh1"].T + params["b_hh1"])
        return (h1, h2), h2

    _, hs = jax.lax.scan(step, (h0, h0), x)          # (T, B, H)
    out = hs @ params["w_fc"].T + params["b_fc"]     # (T, B, O)
    return jnp.transpose(out, (1, 0, 2))


def init_params(key, input_size, hidden_size, output_size):
    # Deterministic synthetic init (U(-1/sqrt(H), 1/sqrt(H)), like PyTorch).
    k = jax.random.split(key, 11)
    s = 1.0 / jnp.sqrt(hidden_size)
    u = lambda kk, shape: jax.random.uniform(kk, shape, jnp.float32, -s, s)
    return {
        "w_ih0": u(k[0], (hidden_size, input_size)),
        "w_hh0": u(k[1], (hidden_size, hidden_size)),
        "b_ih0": u(k[2], (hidden_size,)),
        "b_hh0": u(k[3], (hidden_size,)),
        "w_ih1": u(k[4], (hidden_size, hidden_size)),
        "w_hh1": u(k[5], (hidden_size, hidden_size)),
        "b_ih1": u(k[6], (hidden_size,)),
        "b_hh1": u(k[7], (hidden_size,)),
        "w_fc": u(k[8], (output_size, hidden_size)),
        "b_fc": u(k[9], (output_size,)),
    }


if __name__ == "__main__":
    B, T, I, H, O = 2, 8, 4, 32, 8
    key = jax.random.PRNGKey(0)
    kx, kp = jax.random.split(key)
    x = jax.random.normal(kx, (B, T, I), jnp.float32)
    params = init_params(kp, I, H, O)

    out = jax.block_until_ready(timeseries_rnn_pallas(x, params))
    ref = jax.block_until_ready(timeseries_rnn_ref(x, params))

    assert out.shape == (B, T, O), out.shape
    # bf16 MXU operands (f32 accumulation) -> slightly looser tolerance vs f32 reference.
    max_err = float(jnp.max(jnp.abs(out - ref)))
    assert jnp.allclose(out, ref, atol=3e-2, rtol=3e-2), max_err
    print("KERNEL_OK")
</pallas_src>

<mosaic_0001>
module attributes {stable_mosaic.version = 11 : i64} {
  func.func @rnn_recurrence_kernel(%arg0: i32, %arg1: memref<8x128xf32, #tpu.memory_space<vmem>>, %arg2: memref<8x8x256xf32, #tpu.memory_space<vmem>>, %arg3: memref<256x256xbf16, #tpu.memory_space<vmem>>, %arg4: memref<8x8x128xf32, #tpu.memory_space<vmem>>, %arg5: memref<8x256xf32, #tpu.memory_space<vmem>>) attributes {dimension_semantics = [#tpu.dimension_semantics<arbitrary>], iteration_bounds = array<i64: 1>, scalar_prefetch = 0 : i64, scratch_operands = 1 : i64, tpu.core_type = #tpu.core_type<tc>, window_params = [{pipeline_mode = #tpu.pipeline_mode<synchronous>, transform_indices = @transform_0, window_bounds = array<i64: 8, 128>}, {transform_indices = @transform_1, window_bounds = array<i64: 8, 8, 256>}, {pipeline_mode = #tpu.pipeline_mode<synchronous>, transform_indices = @transform_2, window_bounds = array<i64: 256, 256>}, {transform_indices = @transform_3, window_bounds = array<i64: 8, 8, 128>}]} {
    %c0_i32 = arith.constant 0 : i32
    %0 = arith.cmpi eq, %arg0, %c0_i32 : i32
    %1 = arith.extui %0 : i1 to i32
    %c0_i32_0 = arith.constant 0 : i32
    %2 = arith.cmpi ne, %1, %c0_i32_0 : i32
    scf.if %2 {
      %c0_46 = arith.constant 0 : index
      %c0_47 = arith.constant 0 : index
      %102 = vector.load %arg1[%c0_46, %c0_47] : memref<8x128xf32, #tpu.memory_space<vmem>>, vector<8x128xf32>
      %103 = math.tanh %102 : vector<8x128xf32>
      %c0_48 = arith.constant 0 : index
      %c0_49 = arith.constant 0 : index
      %104 = vector.load %arg5[%c0_48, %c0_49] : memref<8x256xf32, #tpu.memory_space<vmem>>, vector<8x128xf32>
      tpu.vector_store %arg5[%c0_48, %c0_49], %103 {strides = array<i32>} : memref<8x256xf32, #tpu.memory_space<vmem>>, vector<8x128xf32>,
      %cst_50 = arith.constant 0.000000e+00 : f32
      %105 = vector.broadcast %cst_50 : f32 to vector<8x128xf32>
      %c0_51 = arith.constant 0 : index
      %c128 = arith.constant 128 : index
      %106 = vector.load %arg5[%c0_51, %c128] : memref<8x256xf32, #tpu.memory_space<vmem>>, vector<8x128xf32>
      tpu.vector_store %arg5[%c0_51, %c128], %105 {strides = array<i32>} : memref<8x256xf32, #tpu.memory_space<vmem>>, vector<8x128xf32>,
    } else {
    }
    %c0 = arith.constant 0 : index
    %c0_1 = arith.constant 0 : index
    %3 = vector.load %arg3[%c0, %c0_1] : memref<256x256xbf16, #tpu.memory_space<vmem>>, vector<256x256xbf16>
    %c0_2 = arith.constant 0 : index
    %c0_3 = arith.constant 0 : index
    %4 = vector.load %arg5[%c0_2, %c0_3] : memref<8x256xf32, #tpu.memory_space<vmem>>, vector<8x256xf32>
    %c0_i32_4 = arith.constant 0 : i32
    %5 = arith.truncf %4 : vector<8x256xf32> to vector<8x256xbf16>
    %cst = arith.constant dense<0.000000e+00> : vector<8x256xf32>
    %6 = tpu.matmul %5, %3, %cst {dimension_numbers = #tpu.dot_dimension_numbers<[1], [0], [0], [1], [0, 0, 1, 1], [], []>} : vector<8x256xbf16>, vector<256x256xbf16>, vector<8x256xf32> -> vector<8x256xf32>
    %7 = arith.index_cast %c0_i32_4 : i32 to index
    %c0_5 = arith.constant 0 : index
    %c0_6 = arith.constant 0 : index
    %8 = vector.load %arg2[%7, %c0_5, %c0_6] : memref<8x8x256xf32, #tpu.memory_space<vmem>>, vector<1x8x256xf32>
    %9 = vector.shape_cast %8 : vector<1x8x256xf32> to vector<8x256xf32>
    %10 = arith.addf %6, %9 : vector<8x256xf32>
    %11 = math.tanh %10 : vector<8x256xf32>
    %12 = vector.extract_strided_slice %11 {offsets = [0, 128], sizes = [8, 128], strides = [1, 1]} : vector<8x256xf32> to vector<8x128xf32>
    %13 = arith.index_cast %c0_i32_4 : i32 to index
    %c0_7 = arith.constant 0 : index
    %c0_8 = arith.constant 0 : index
    %14 = vector.load %arg4[%13, %c0_7, %c0_8] : memref<8x8x128xf32, #tpu.memory_space<vmem>>, vector<1x8x128xf32>
    %15 = vector.shape_cast %14 : vector<1x8x128xf32> to vector<8x128xf32>
    %16 = vector.shape_cast %12 : vector<8x128xf32> to vector<1x8x128xf32>
    tpu.vector_store %arg4[%13, %c0_7, %c0_8], %16 {strides = array<i32>} : memref<8x8x128xf32, #tpu.memory_space<vmem>>, vector<1x8x128xf32>,
    %c1_i32 = arith.constant 1 : i32
    %17 = arith.truncf %11 : vector<8x256xf32> to vector<8x256xbf16>
    %cst_9 = arith.constant dense<0.000000e+00> : vector<8x256xf32>
    %18 = tpu.matmul %17, %3, %cst_9 {dimension_numbers = #tpu.dot_dimension_numbers<[1], [0], [0], [1], [0, 0, 1, 1], [], []>} : vector<8x256xbf16>, vector<256x256xbf16>, vector<8x256xf32> -> vector<8x256xf32>
    %19 = arith.index_cast %c1_i32 : i32 to index
    %c0_10 = arith.constant 0 : index
    %c0_11 = arith.constant 0 : index
    %20 = vector.load %arg2[%19, %c0_10, %c0_11] : memref<8x8x256xf32, #tpu.memory_space<vmem>>, vector<1x8x256xf32>
    %21 = vector.shape_cast %20 : vector<1x8x256xf32> to vector<8x256xf32>
    %22 = arith.addf %18, %21 : vector<8x256xf32>
    %23 = math.tanh %22 : vector<8x256xf32>
    %24 = vector.extract_strided_slice %23 {offsets = [0, 128], sizes = [8, 128], strides = [1, 1]} : vector<8x256xf32> to vector<8x128xf32>
    %25 = arith.index_cast %c1_i32 : i32 to index
    %c0_12 = arith.constant 0 : index
    %c0_13 = arith.constant 0 : index
    %26 = vector.load %arg4[%25, %c0_12, %c0_13] : memref<8x8x128xf32, #tpu.memory_space<vmem>>, vector<1x8x128xf32>
    %27 = vector.shape_cast %26 : vector<1x8x128xf32> to vector<8x128xf32>
    %28 = vector.shape_cast %24 : vector<8x128xf32> to vector<1x8x128xf32>
    tpu.vector_store %arg4[%25, %c0_12, %c0_13], %28 {strides = array<i32>} : memref<8x8x128xf32, #tpu.memory_space<vmem>>, vector<1x8x128xf32>,
    %c2_i32 = arith.constant 2 : i32
    %29 = arith.truncf %23 : vector<8x256xf32> to vector<8x256xbf16>
    %cst_14 = arith.constant dense<0.000000e+00> : vector<8x256xf32>
    %30 = tpu.matmul %29, %3, %cst_14 {dimension_numbers = #tpu.dot_dimension_numbers<[1], [0], [0], [1], [0, 0, 1, 1], [], []>} : vector<8x256xbf16>, vector<256x256xbf16>, vector<8x256xf32> -> vector<8x256xf32>
    %31 = arith.index_cast %c2_i32 : i32 to index
    %c0_15 = arith.constant 0 : index
    %c0_16 = arith.constant 0 : index
    %32 = vector.load %arg2[%31, %c0_15, %c0_16] : memref<8x8x256xf32, #tpu.memory_space<vmem>>, vector<1x8x256xf32>
    %33 = vector.shape_cast %32 : vector<1x8x256xf32> to vector<8x256xf32>
    %34 = arith.addf %30, %33 : vector<8x256xf32>
    %35 = math.tanh %34 : vector<8x256xf32>
    %36 = vector.extract_strided_slice %35 {offsets = [0, 128], sizes = [8, 128], strides = [1, 1]} : vector<8x256xf32> to vector<8x128xf32>
    %37 = arith.index_cast %c2_i32 : i32 to index
    %c0_17 = arith.constant 0 : index
    %c0_18 = arith.constant 0 : index
    %38 = vector.load %arg4[%37, %c0_17, %c0_18] : memref<8x8x128xf32, #tpu.memory_space<vmem>>, vector<1x8x128xf32>
    %39 = vector.shape_cast %38 : vector<1x8x128xf32> to vector<8x128xf32>
    %40 = vector.shape_cast %36 : vector<8x128xf32> to vector<1x8x128xf32>
    tpu.vector_store %arg4[%37, %c0_17, %c0_18], %40 {strides = array<i32>} : memref<8x8x128xf32, #tpu.memory_space<vmem>>, vector<1x8x128xf32>,
    %c3_i32 = arith.constant 3 : i32
    %41 = arith.truncf %35 : vector<8x256xf32> to vector<8x256xbf16>
    %cst_19 = arith.constant dense<0.000000e+00> : vector<8x256xf32>
    %42 = tpu.matmul %41, %3, %cst_19 {dimension_numbers = #tpu.dot_dimension_numbers<[1], [0], [0], [1], [0, 0, 1, 1], [], []>} : vector<8x256xbf16>, vector<256x256xbf16>, vector<8x256xf32> -> vector<8x256xf32>
    %43 = arith.index_cast %c3_i32 : i32 to index
    %c0_20 = arith.constant 0 : index
    %c0_21 = arith.constant 0 : index
    %44 = vector.load %arg2[%43, %c0_20, %c0_21] : memref<8x8x256xf32, #tpu.memory_space<vmem>>, vector<1x8x256xf32>
    %45 = vector.shape_cast %44 : vector<1x8x256xf32> to vector<8x256xf32>
    %46 = arith.addf %42, %45 : vector<8x256xf32>
    %47 = math.tanh %46 : vector<8x256xf32>
    %48 = vector.extract_strided_slice %47 {offsets = [0, 128], sizes = [8, 128], strides = [1, 1]} : vector<8x256xf32> to vector<8x128xf32>
    %49 = arith.index_cast %c3_i32 : i32 to index
    %c0_22 = arith.constant 0 : index
    %c0_23 = arith.constant 0 : index
    %50 = vector.load %arg4[%49, %c0_22, %c0_23] : memref<8x8x128xf32, #tpu.memory_space<vmem>>, vector<1x8x128xf32>
    %51 = vector.shape_cast %50 : vector<1x8x128xf32> to vector<8x128xf32>
    %52 = vector.shape_cast %48 : vector<8x128xf32> to vector<1x8x128xf32>
    tpu.vector_store %arg4[%49, %c0_22, %c0_23], %52 {strides = array<i32>} : memref<8x8x128xf32, #tpu.memory_space<vmem>>, vector<1x8x128xf32>,
    %c4_i32 = arith.constant 4 : i32
    %53 = arith.truncf %47 : vector<8x256xf32> to vector<8x256xbf16>
    %cst_24 = arith.constant dense<0.000000e+00> : vector<8x256xf32>
    %54 = tpu.matmul %53, %3, %cst_24 {dimension_numbers = #tpu.dot_dimension_numbers<[1], [0], [0], [1], [0, 0, 1, 1], [], []>} : vector<8x256xbf16>, vector<256x256xbf16>, vector<8x256xf32> -> vector<8x256xf32>
    %55 = arith.index_cast %c4_i32 : i32 to index
    %c0_25 = arith.constant 0 : index
    %c0_26 = arith.constant 0 : index
    %56 = vector.load %arg2[%55, %c0_25, %c0_26] : memref<8x8x256xf32, #tpu.memory_space<vmem>>, vector<1x8x256xf32>
    %57 = vector.shape_cast %56 : vector<1x8x256xf32> to vector<8x256xf32>
    %58 = arith.addf %54, %57 : vector<8x256xf32>
    %59 = math.tanh %58 : vector<8x256xf32>
    %60 = vector.extract_strided_slice %59 {offsets = [0, 128], sizes = [8, 128], strides = [1, 1]} : vector<8x256xf32> to vector<8x128xf32>
    %61 = arith.index_cast %c4_i32 : i32 to index
    %c0_27 = arith.constant 0 : index
    %c0_28 = arith.constant 0 : index
    %62 = vector.load %arg4[%61, %c0_27, %c0_28] : memref<8x8x128xf32, #tpu.memory_space<vmem>>, vector<1x8x128xf32>
    %63 = vector.shape_cast %62 : vector<1x8x128xf32> to vector<8x128xf32>
    %64 = vector.shape_cast %60 : vector<8x128xf32> to vector<1x8x128xf32>
    tpu.vector_store %arg4[%61, %c0_27, %c0_28], %64 {strides = array<i32>} : memref<8x8x128xf32, #tpu.memory_space<vmem>>, vector<1x8x128xf32>,
    %c5_i32 = arith.constant 5 : i32
    %65 = arith.truncf %59 : vector<8x256xf32> to vector<8x256xbf16>
    %cst_29 = arith.constant dense<0.000000e+00> : vector<8x256xf32>
    %66 = tpu.matmul %65, %3, %cst_29 {dimension_numbers = #tpu.dot_dimension_numbers<[1], [0], [0], [1], [0, 0, 1, 1], [], []>} : vector<8x256xbf16>, vector<256x256xbf16>, vector<8x256xf32> -> vector<8x256xf32>
    %67 = arith.index_cast %c5_i32 : i32 to index
    %c0_30 = arith.constant 0 : index
    %c0_31 = arith.constant 0 : index
    %68 = vector.load %arg2[%67, %c0_30, %c0_31] : memref<8x8x256xf32, #tpu.memory_space<vmem>>, vector<1x8x256xf32>
    %69 = vector.shape_cast %68 : vector<1x8x256xf32> to vector<8x256xf32>
    %70 = arith.addf %66, %69 : vector<8x256xf32>
    %71 = math.tanh %70 : vector<8x256xf32>
    %72 = vector.extract_strided_slice %71 {offsets = [0, 128], sizes = [8, 128], strides = [1, 1]} : vector<8x256xf32> to vector<8x128xf32>
    %73 = arith.index_cast %c5_i32 : i32 to index
    %c0_32 = arith.constant 0 : index
    %c0_33 = arith.constant 0 : index
    %74 = vector.load %arg4[%73, %c0_32, %c0_33] : memref<8x8x128xf32, #tpu.memory_space<vmem>>, vector<1x8x128xf32>
    %75 = vector.shape_cast %74 : vector<1x8x128xf32> to vector<8x128xf32>
    %76 = vector.shape_cast %72 : vector<8x128xf32> to vector<1x8x128xf32>
    tpu.vector_store %arg4[%73, %c0_32, %c0_33], %76 {strides = array<i32>} : memref<8x8x128xf32, #tpu.memory_space<vmem>>, vector<1x8x128xf32>,
    %c6_i32 = arith.constant 6 : i32
    %77 = arith.truncf %71 : vector<8x256xf32> to vector<8x256xbf16>
    %cst_34 = arith.constant dense<0.000000e+00> : vector<8x256xf32>
    %78 = tpu.matmul %77, %3, %cst_34 {dimension_numbers = #tpu.dot_dimension_numbers<[1], [0], [0], [1], [0, 0, 1, 1], [], []>} : vector<8x256xbf16>, vector<256x256xbf16>, vector<8x256xf32> -> vector<8x256xf32>
    %79 = arith.index_cast %c6_i32 : i32 to index
    %c0_35 = arith.constant 0 : index
    %c0_36 = arith.constant 0 : index
    %80 = vector.load %arg2[%79, %c0_35, %c0_36] : memref<8x8x256xf32, #tpu.memory_space<vmem>>, vector<1x8x256xf32>
    %81 = vector.shape_cast %80 : vector<1x8x256xf32> to vector<8x256xf32>
    %82 = arith.addf %78, %81 : vector<8x256xf32>
    %83 = math.tanh %82 : vector<8x256xf32>
    %84 = vector.extract_strided_slice %83 {offsets = [0, 128], sizes = [8, 128], strides = [1, 1]} : vector<8x256xf32> to vector<8x128xf32>
    %85 = arith.index_cast %c6_i32 : i32 to index
    %c0_37 = arith.constant 0 : index
    %c0_38 = arith.constant 0 : index
    %86 = vector.load %arg4[%85, %c0_37, %c0_38] : memref<8x8x128xf32, #tpu.memory_space<vmem>>, vector<1x8x128xf32>
    %87 = vector.shape_cast %86 : vector<1x8x128xf32> to vector<8x128xf32>
    %88 = vector.shape_cast %84 : vector<8x128xf32> to vector<1x8x128xf32>
    tpu.vector_store %arg4[%85, %c0_37, %c0_38], %88 {strides = array<i32>} : memref<8x8x128xf32, #tpu.memory_space<vmem>>, vector<1x8x128xf32>,
    %c7_i32 = arith.constant 7 : i32
    %89 = arith.truncf %83 : vector<8x256xf32> to vector<8x256xbf16>
    %cst_39 = arith.constant dense<0.000000e+00> : vector<8x256xf32>
    %90 = tpu.matmul %89, %3, %cst_39 {dimension_numbers = #tpu.dot_dimension_numbers<[1], [0], [0], [1], [0, 0, 1, 1], [], []>} : vector<8x256xbf16>, vector<256x256xbf16>, vector<8x256xf32> -> vector<8x256xf32>
    %91 = arith.index_cast %c7_i32 : i32 to index
    %c0_40 = arith.constant 0 : index
    %c0_41 = arith.constant 0 : index
    %92 = vector.load %arg2[%91, %c0_40, %c0_41] : memref<8x8x256xf32, #tpu.memory_space<vmem>>, vector<1x8x256xf32>
    %93 = vector.shape_cast %92 : vector<1x8x256xf32> to vector<8x256xf32>
    %94 = arith.addf %90, %93 : vector<8x256xf32>
    %95 = math.tanh %94 : vector<8x256xf32>
    %96 = vector.extract_strided_slice %95 {offsets = [0, 128], sizes = [8, 128], strides = [1, 1]} : vector<8x256xf32> to vector<8x128xf32>
    %97 = arith.index_cast %c7_i32 : i32 to index
    %c0_42 = arith.constant 0 : index
    %c0_43 = arith.constant 0 : index
    %98 = vector.load %arg4[%97, %c0_42, %c0_43] : memref<8x8x128xf32, #tpu.memory_space<vmem>>, vector<1x8x128xf32>
    %99 = vector.shape_cast %98 : vector<1x8x128xf32> to vector<8x128xf32>
    %100 = vector.shape_cast %96 : vector<8x128xf32> to vector<1x8x128xf32>
    tpu.vector_store %arg4[%97, %c0_42, %c0_43], %100 {strides = array<i32>} : memref<8x8x128xf32, #tpu.memory_space<vmem>>, vector<1x8x128xf32>,
    %c8_i32 = arith.constant 8 : i32
    %c0_44 = arith.constant 0 : index
    %c0_45 = arith.constant 0 : index
    %101 = vector.load %arg5[%c0_44, %c0_45] : memref<8x256xf32, #tpu.memory_space<vmem>>, vector<8x256xf32>
    tpu.vector_store %arg5[%c0_44, %c0_45], %95 {strides = array<i32>} : memref<8x256xf32, #tpu.memory_space<vmem>>, vector<8x256xf32>,
    return
  }
  func.func @transform_0(%arg0: i32) -> (i32, i32) {
    %c0_i32 = arith.constant 0 : i32
    %c0_i32_0 = arith.constant 0 : i32
    %c0_i32_1 = arith.constant 0 : i32
    return %c0_i32, %c0_i32_0 : i32, i32
  }
  func.func @transform_1(%arg0: i32) -> (i32, i32, i32) {
    %c0_i32 = arith.constant 0 : i32
    %c0_i32_0 = arith.constant 0 : i32
    %c0_i32_1 = arith.constant 0 : i32
    return %arg0, %c0_i32, %c0_i32_0 : i32, i32, i32
  }
  func.func @transform_2(%arg0: i32) -> (i32, i32) {
    %c0_i32 = arith.constant 0 : i32
    %c0_i32_0 = arith.constant 0 : i32
    %c0_i32_1 = arith.constant 0 : i32
    return %c0_i32, %c0_i32_0 : i32, i32
  }
  func.func @transform_3(%arg0: i32) -> (i32, i32, i32) {
    %c0_i32 = arith.constant 0 : i32
    %c0_i32_0 = arith.constant 0 : i32
    %c0_i32_1 = arith.constant 0 : i32
    return %arg0, %c0_i32, %c0_i32_0 : i32, i32, i32
  }
}

</mosaic_0001>

<bundles_post_ra>
// kernel: timeseries_rnn_pallas.1
= control target key start
LH: loop header
LB: loop body
LE: loop exit
PB: predicated region body
PF: predicated region fallthrough
CT: control target
= control target key end

     0   :  { %v754_v1 = vmov 0.0|0.0   ;;  %s1263_s2 = inlined_call_operand.vmem [shape: bf16[256,256], index: 2, kind: input, shape index: {}]   ;;  %s1264_s0 = inlined_call_operand.vmem [shape: f32[8,128], index: 0, kind: input, shape index: {}]   ;;  %s1265_s1 = inlined_call_operand.vmem [shape: f32[8,8,256], index: 1, kind: input, shape index: {}]   ;;  %s1266_s3 = inlined_call_operand.vmem [shape: f32[8,8,128], index: 3, kind: output, shape index: {}]  }
   0x1   :  { %v778_v0 = vld [vmem:[%s1263_s2 + $0x74] ss:$8 sps:$4 sm:$0xff]   ;;  %252 = vmatprep.mubr.bf16.mxu0 %v754_v1  ;;  %v783_v2 = vld [vmem:[%s1263_s2 + $0x70] ss:$8 sps:$4 sm:$0xff]   ;;  %v789_v3 = vld [vmem:[%s1263_s2 + $0x64] ss:$8 sps:$4 sm:$0xff]  }
   0x2   :  { %220 = vmatprep.subr.bf16.mxu0 %v778_v0  ;;  %269 = vmatprep.subr.bf16.mxu1 %v778_v0  ;;  %v796_v4 = vld [vmem:[%s1263_s2 + $0x60] ss:$8 sps:$4 sm:$0xff]   ;;  %v803_v5 = vld [vmem:[%s1263_s2 + $0x54] ss:$8 sps:$4 sm:$0xff]   ;;  %v810_v6 = vld [vmem:[%s1263_s2 + $0x50] ss:$8 sps:$4 sm:$0xff]  }
   0x3   :  { %221 = vmatpush1.bf16.msra.mxu0 %v783_v2  ;;  %270 = vmatpush1.bf16.msra.mxu1 %v783_v2  ;;  %v817_v7 = vld [vmem:[%s1263_s2 + $0x44] ss:$8 sps:$4 sm:$0xff]   ;;  %v824_v8 = vld [vmem:[%s1263_s2 + $0x40] ss:$8 sps:$4 sm:$0xff]   ;;  %v831_v9 = vld [vmem:[%s1263_s2 + $0x34] ss:$8 sps:$4 sm:$0xff]  }
   0x4   :  { %222 = vmatprep.subr.bf16.mxu0 %v789_v3  ;;  %271 = vmatprep.subr.bf16.mxu1 %v789_v3  ;;  %v838_v10 = vld [vmem:[%s1263_s2 + $0x30] ss:$8 sps:$4 sm:$0xff]   ;;  %v845_v11 = vld [vmem:[%s1263_s2 + $0x24] ss:$8 sps:$4 sm:$0xff]   ;;  %v852_v12 = vld [vmem:[%s1263_s2 + $0x20] ss:$8 sps:$4 sm:$0xff]  }
   0x5   :  { %v859_v13 = vld [vmem:[%s1263_s2 + $0x14] ss:$8 sps:$4 sm:$0xff]   ;;  %v866_v14 = vld [vmem:[%s1263_s2 + $0x10] ss:$8 sps:$4 sm:$0xff]   ;;  %v873_v15 = vld [vmem:[%s1263_s2 + $0x4] ss:$8 sps:$4 sm:$0xff]  }
   0x6   :  { %v880_v16 = vld [vmem:[%s1263_s2] ss:$8 sps:$4 sm:$0xff]   ;;  %v887_v17 = vld [vmem:[%s1263_s2 + $0xf4] ss:$8 sps:$4 sm:$0xff]   ;;  %v894_v18 = vld [vmem:[%s1263_s2 + $0xf0] ss:$8 sps:$4 sm:$0xff]  }
   0x7   :  { %223 = vmatpush1.bf16.msra.mxu0 %v796_v4  ;;  %272 = vmatpush1.bf16.msra.mxu1 %v796_v4  ;;  %v901_v19 = vld [vmem:[%s1263_s2 + $0xe4] ss:$8 sps:$4 sm:$0xff]   ;;  %v908_v20 = vld [vmem:[%s1263_s2 + $0xe0] ss:$8 sps:$4 sm:$0xff]   ;;  %v915_v21 = vld [vmem:[%s1263_s2 + $0xd4] ss:$8 sps:$4 sm:$0xff]  }
   0x8   :  { %224 = vmatprep.subr.bf16.mxu0 %v803_v5  ;;  %273 = vmatprep.subr.bf16.mxu1 %v803_v5  ;;  %v922_v22 = vld [vmem:[%s1263_s2 + $0xd0] ss:$8 sps:$4 sm:$0xff]   ;;  %v929_v23 = vld [vmem:[%s1263_s2 + $0xc4] ss:$8 sps:$4 sm:$0xff]   ;;  %v936_v24 = vld [vmem:[%s1263_s2 + $0xc0] ss:$8 sps:$4 sm:$0xff]  }
   0x9   :  { %v18_v25 = vld [vmem:[%s1264_s0] sm:$0xff]  ;;  %v946_v26 = vld [vmem:[%s1263_s2 + $0xb4] ss:$8 sps:$4 sm:$0xff]   ;;  %v953_v27 = vld [vmem:[%s1263_s2 + $0xb0] ss:$8 sps:$4 sm:$0xff]  }
   0xa   :  { %722 = vtanh.f32 %v18_v25  ;;  %v960_v28 = vld [vmem:[%s1263_s2 + $0xa4] ss:$8 sps:$4 sm:$0xff]   ;;  %v967_v29 = vld [vmem:[%s1263_s2 + $0xa0] ss:$8 sps:$4 sm:$0xff]   ;;  %v974_v30 = vld [vmem:[%s1263_s2 + $0x94] ss:$8 sps:$4 sm:$0xff]  }
   0xb   :  { %225 = vmatpush1.bf16.msra.mxu0 %v810_v6  ;;  %274 = vmatpush1.bf16.msra.mxu1 %v810_v6  ;;  %v981_v31 = vld [vmem:[%s1263_s2 + $0x90] ss:$8 sps:$4 sm:$0xff]   ;;  %v988_v32 = vld [vmem:[%s1263_s2 + $0x84] ss:$8 sps:$4 sm:$0xff]   ;;  %v995_v34 = vld [vmem:[%s1263_s2 + $0x80] ss:$8 sps:$4 sm:$0xff]  }
   0xc   :  { %226 = vmatprep.subr.bf16.mxu0 %v817_v7  ;;  %275 = vmatprep.subr.bf16.mxu1 %v817_v7  ;;  %v58_v36 = vld [vmem:[%s1265_s1] sm:$0xff]  ;;  %v59_v38 = vld [vmem:[%s1265_s1 + $0x8] sm:$0xff]  ;;  %v652_v48 = vld [vmem:[%s1265_s1 + $0x10] sm:$0xff] }
   0xd   :  { %v653_v50 = vld [vmem:[%s1265_s1 + $0x18] sm:$0xff]  ;;  %v655_v60 = vld [vmem:[%s1265_s1 + $0x20] sm:$0xff]  ;;  %v656_v62 = vld [vmem:[%s1265_s1 + $0x28] sm:$0xff] }
   0xf   :  { %227 = vmatpush1.bf16.msra.mxu0 %v824_v8  ;;  %276 = vmatpush1.bf16.msra.mxu1 %v824_v8 }
  0x10   :  { %228 = vmatprep.subr.bf16.mxu0 %v831_v9  ;;  %277 = vmatprep.subr.bf16.mxu1 %v831_v9 }
  0x13   :  { %229 = vmatpush1.bf16.msra.mxu0 %v838_v10  ;;  %278 = vmatpush1.bf16.msra.mxu1 %v838_v10 }
  0x14   :  { %230 = vmatprep.subr.bf16.mxu0 %v845_v11  ;;  %279 = vmatprep.subr.bf16.mxu1 %v845_v11 }
  0x17   :  { %231 = vmatpush1.bf16.msra.mxu0 %v852_v12  ;;  %280 = vmatpush1.bf16.msra.mxu1 %v852_v12  ;;  %v723_v33 = vpop.eup %722 }
  0x18   :  { %232 = vmatprep.subr.bf16.mxu0 %v859_v13  ;;  %281 = vmatprep.subr.bf16.mxu1 %v859_v13  ;;  %v56_v35 = vpack.c.bf16 %v723_v33, %v723_v33 }
  0x1b   :  { %233 = vmatpush1.bf16.msra.mxu0 %v866_v14  ;;  %282 = vmatpush1.bf16.msra.mxu1 %v866_v14 }
  0x1c   :  { %234 = vmatprep.subr.bf16.mxu0 %v873_v15  ;;  %283 = vmatprep.subr.bf16.mxu1 %v873_v15 }
  0x1f   :  { %235 = vmatpush1.bf16.msra.mxu0 %v880_v16  ;;  %284 = vmatpush1.bf16.msra.mxu1 %v880_v16 }
  0x20   :  { %236 = vmatprep.subr.bf16.mxu0 %v887_v17  ;;  %285 = vmatprep.subr.bf16.mxu1 %v887_v17 }
  0x23   :  { %237 = vmatpush2.bf16.msra.mxu0 %v894_v18  ;;  %286 = vmatpush2.bf16.msra.mxu1 %v894_v18 }
  0x24   :  { %238 = vmatprep.subr.bf16.mxu0 %v901_v19  ;;  %287 = vmatprep.subr.bf16.mxu1 %v901_v19 }
  0x27   :  { %239 = vmatpush2.bf16.msra.mxu0 %v908_v20  ;;  %288 = vmatpush2.bf16.msra.mxu1 %v908_v20 }
  0x28   :  { %240 = vmatprep.subr.bf16.mxu0 %v915_v21  ;;  %289 = vmatprep.subr.bf16.mxu1 %v915_v21 }
  0x2b   :  { %241 = vmatpush2.bf16.msra.mxu0 %v922_v22  ;;  %290 = vmatpush2.bf16.msra.mxu1 %v922_v22 }
  0x2c   :  { %242 = vmatprep.subr.bf16.mxu0 %v929_v23  ;;  %291 = vmatprep.subr.bf16.mxu1 %v929_v23 }
  0x2f   :  { %243 = vmatpush2.bf16.msra.mxu0 %v936_v24  ;;  %292 = vmatpush2.bf16.msra.mxu1 %v936_v24 }
  0x30   :  { %244 = vmatprep.subr.bf16.mxu0 %v946_v26  ;;  %293 = vmatprep.subr.bf16.mxu1 %v946_v26 }
  0x33   :  { %245 = vmatpush2.bf16.msra.mxu0 %v953_v27  ;;  %294 = vmatpush2.bf16.msra.mxu1 %v953_v27 }
  0x34   :  { %246 = vmatprep.subr.bf16.mxu0 %v960_v28  ;;  %295 = vmatprep.subr.bf16.mxu1 %v960_v28 }
  0x37   :  { %247 = vmatpush2.bf16.msra.mxu0 %v967_v29  ;;  %296 = vmatpush2.bf16.msra.mxu1 %v967_v29 }
  0x38   :  { %248 = vmatprep.subr.bf16.mxu0 %v974_v30  ;;  %297 = vmatprep.subr.bf16.mxu1 %v974_v30 }
  0x3b   :  { %249 = vmatpush2.bf16.msra.mxu0 %v981_v31  ;;  %298 = vmatpush2.bf16.msra.mxu1 %v981_v31 }
  0x3c   :  { %250 = vmatprep.subr.bf16.mxu0 %v988_v32  ;;  %299 = vmatprep.subr.bf16.mxu1 %v988_v32 }
  0x3f   :  { %251 = vmatpush2.bf16.msra.mxu0 %v995_v34  ;;  %300 = vmatpush2.bf16.msra.mxu1 %v995_v34 }
  0x40   :  { %319 = vmatprep.subr.bf16.mxu0 %v778_v0  ;;  %369 = vmatprep.subr.bf16.mxu1 %v778_v0 }
  0x42   :  { %253 = vmatmul.mubr.bf16.vlgmr.msra.gmra.mxu0 %v56_v35 }
  0x43   :  { %320 = vmatpush1.bf16.msra.mxu0 %v783_v2 }
  0x44   :  { %321 = vmatprep.subr.bf16.mxu0 %v789_v3 }
  0x47   :  { %322 = vmatpush1.bf16.msra.mxu0 %v796_v4 }
  0x48   :  { %323 = vmatprep.subr.bf16.mxu0 %v803_v5 }
  0x4b   :  { %324 = vmatpush1.bf16.msra.mxu0 %v810_v6 }
  0x4c   :  { %325 = vmatprep.subr.bf16.mxu0 %v817_v7 }
  0x4f   :  { %326 = vmatpush1.bf16.msra.mxu0 %v824_v8 }
  0x50   :  { %327 = vmatprep.subr.bf16.mxu0 %v831_v9 }
  0x53   :  { %328 = vmatpush1.bf16.msra.mxu0 %v838_v10 }
  0x54   :  { %329 = vmatprep.subr.bf16.mxu0 %v845_v11 }
  0x57   :  { %330 = vmatpush1.bf16.msra.mxu0 %v852_v12 }
  0x58   :  { %331 = vmatprep.subr.bf16.mxu0 %v859_v13 }
  0x5b   :  { %332 = vmatpush1.bf16.msra.mxu0 %v866_v14 }
  0x5c   :  { %333 = vmatprep.subr.bf16.mxu0 %v873_v15 }
  0x5f   :  { %334 = vmatpush1.bf16.msra.mxu0 %v880_v16 }
  0x60   :  { %335 = vmatprep.subr.bf16.mxu0 %v887_v17 }
  0x63   :  { %336 = vmatpush2.bf16.msra.mxu0 %v894_v18 }
  0x64   :  { %337 = vmatprep.subr.bf16.mxu0 %v901_v19 }
  0x67   :  { %338 = vmatpush2.bf16.msra.mxu0 %v908_v20 }
  0x68   :  { %339 = vmatprep.subr.bf16.mxu0 %v915_v21 }
  0x6b   :  { %340 = vmatpush2.bf16.msra.mxu0 %v922_v22 }
  0x6c   :  { %341 = vmatprep.subr.bf16.mxu0 %v929_v23 }
  0x6f   :  { %342 = vmatpush2.bf16.msra.mxu0 %v936_v24 }
  0x70   :  { %343 = vmatprep.subr.bf16.mxu0 %v946_v26 }
  0x73   :  { %344 = vmatpush2.bf16.msra.mxu0 %v953_v27 }
  0x74   :  { %345 = vmatprep.subr.bf16.mxu0 %v960_v28 }
  0x77   :  { %346 = vmatpush2.bf16.msra.mxu0 %v967_v29 }
  0x78   :  { %347 = vmatprep.subr.bf16.mxu0 %v974_v30 }
  0x7b   :  { %348 = vmatpush2.bf16.msra.mxu0 %v981_v31 }
  0x7c   :  { %349 = vmatprep.subr.bf16.mxu0 %v988_v32 }
  0x7f   :  { %350 = vmatpush2.bf16.msra.mxu0 %v995_v34 }
  0x80   :  { %419 = vmatprep.subr.bf16.mxu0 %v778_v0 }
 0x102   :  { %v254_v37 = vpop.f32.mrf.mxu0 }
 0x103   :  { %v255_v39 = vadd.f32 %v254_v37, %v58_v36 }
 0x104   :  { %v256_v40 = vpop.f32.mrf.mxu0 }
 0x105   :  { %v257_v41 = vadd.f32 %v256_v40, %v59_v38  ;;  %724 = vtanh.f32 %v255_v39  ;;  %v658_v40 = vld [vmem:[%s1265_s1 + $0x30] sm:$0xff] }
 0x106   :  { %v258_v42 = vpop.f32.mrf.mxu0 }
 0x107   :  { %726 = vtanh.f32 %v257_v41  ;;  %v659_v42 = vld [vmem:[%s1265_s1 + $0x38] sm:$0xff] }
 0x108   :  { %v259_v43 = vpop.f32.mrf.mxu0 }
 0x112   :  { %v725_v44 = vpop.eup %724 }
 0x113   :  { %v264_v47 = vpack.c.bf16 %v725_v44, %v725_v44 }
 0x114   :  { %v727_v45 = vpop.eup %726 }
 0x115   :  { %263 = vst [vmem:[%s1266_s3] sm:$0xff] %v727_v45  ;;  %v265_v46 = vpack.c.bf16 %v727_v45, %v727_v45 }
 0x117   :  { %301 = vmatprep.mubr.bf16.mxu1 %v265_v46 }
 0x118   :  { %302 = vmatmul.mubr.bf16.vlgmr.msra.gmra.mxu1 %v264_v47 }
 0x119   :  { %370 = vmatpush1.bf16.msra.mxu1 %v783_v2 }
 0x11a   :  { %371 = vmatprep.subr.bf16.mxu1 %v789_v3 }
 0x11d   :  { %372 = vmatpush1.bf16.msra.mxu1 %v796_v4 }
 0x11e   :  { %373 = vmatprep.subr.bf16.mxu1 %v803_v5 }
 0x121   :  { %374 = vmatpush1.bf16.msra.mxu1 %v810_v6 }
 0x122   :  { %375 = vmatprep.subr.bf16.mxu1 %v817_v7 }
 0x125   :  { %376 = vmatpush1.bf16.msra.mxu1 %v824_v8 }
 0x126   :  { %377 = vmatprep.subr.bf16.mxu1 %v831_v9 }
 0x129   :  { %378 = vmatpush1.bf16.msra.mxu1 %v838_v10 }
 0x12a   :  { %379 = vmatprep.subr.bf16.mxu1 %v845_v11 }
 0x12d   :  { %380 = vmatpush1.bf16.msra.mxu1 %v852_v12 }
 0x12e   :  { %381 = vmatprep.subr.bf16.mxu1 %v859_v13 }
 0x131   :  { %382 = vmatpush1.bf16.msra.mxu1 %v866_v14 }
 0x132   :  { %383 = vmatprep.subr.bf16.mxu1 %v873_v15 }
 0x135   :  { %384 = vmatpush1.bf16.msra.mxu1 %v880_v16 }
 0x136   :  { %385 = vmatprep.subr.bf16.mxu1 %v887_v17 }
 0x139   :  { %386 = vmatpush2.bf16.msra.mxu1 %v894_v18 }
 0x13a   :  { %387 = vmatprep.subr.bf16.mxu1 %v901_v19 }
 0x13d   :  { %388 = vmatpush2.bf16.msra.mxu1 %v908_v20 }
 0x13e   :  { %389 = vmatprep.subr.bf16.mxu1 %v915_v21 }
 0x141   :  { %390 = vmatpush2.bf16.msra.mxu1 %v922_v22 }
 0x142   :  { %391 = vmatprep.subr.bf16.mxu1 %v929_v23 }
 0x145   :  { %392 = vmatpush2.bf16.msra.mxu1 %v936_v24 }
 0x146   :  { %393 = vmatprep.subr.bf16.mxu1 %v946_v26 }
 0x149   :  { %394 = vmatpush2.bf16.msra.mxu1 %v953_v27 }
 0x14a   :  { %395 = vmatprep.subr.bf16.mxu1 %v960_v28 }
 0x14d   :  { %396 = vmatpush2.bf16.msra.mxu1 %v967_v29 }
 0x14e   :  { %397 = vmatprep.subr.bf16.mxu1 %v974_v30 }
 0x151   :  { %398 = vmatpush2.bf16.msra.mxu1 %v981_v31 }
 0x152   :  { %399 = vmatprep.subr.bf16.mxu1 %v988_v32 }
 0x155   :  { %400 = vmatpush2.bf16.msra.mxu1 %v995_v34 }
 0x156   :  { %469 = vmatprep.subr.bf16.mxu1 %v778_v0 }
 0x1d8   :  { %v303_v49 = vpop.f32.mrf.mxu1 }
 0x1d9   :  { %v304_v51 = vadd.f32 %v652_v48, %v303_v49 }
 0x1da   :  { %v305_v52 = vpop.f32.mrf.mxu1 }
 0x1db   :  { %v306_v53 = vadd.f32 %v653_v50, %v305_v52  ;;  %728 = vtanh.f32 %v304_v51  ;;  %v661_v51 = vld [vmem:[%s1265_s1 + $0x40] sm:$0xff] }
 0x1dc   :  { %v307_v54 = vpop.f32.mrf.mxu1 }
 0x1dd   :  { %730 = vtanh.f32 %v306_v53  ;;  %v662_v53 = vld [vmem:[%s1265_s1 + $0x48] sm:$0xff] }
 0x1de   :  { %v308_v55 = vpop.f32.mrf.mxu1 }
 0x1e8   :  { %v729_v56 = vpop.eup %728 }
 0x1e9   :  { %v314_v59 = vpack.c.bf16 %v729_v56, %v729_v56 }
 0x1ea   :  { %v731_v57 = vpop.eup %730 }
 0x1eb   :  { %654 = vst [vmem:[%s1266_s3 + $0x8] sm:$0xff] %v731_v57  ;;  %v315_v58 = vpack.c.bf16 %v731_v57, %v731_v57 }
 0x1ed   :  { %351 = vmatprep.mubr.bf16.mxu0 %v315_v58 }
 0x1ee   :  { %352 = vmatmul.mubr.bf16.vlgmr.msra.gmra.mxu0 %v314_v59 }
 0x1ef   :  { %420 = vmatpush1.bf16.msra.mxu0 %v783_v2 }
 0x1f0   :  { %421 = vmatprep.subr.bf16.mxu0 %v789_v3 }
 0x1f3   :  { %422 = vmatpush1.bf16.msra.mxu0 %v796_v4 }
 0x1f4   :  { %423 = vmatprep.subr.bf16.mxu0 %v803_v5 }
 0x1f7   :  { %424 = vmatpush1.bf16.msra.mxu0 %v810_v6 }
 0x1f8   :  { %425 = vmatprep.subr.bf16.mxu0 %v817_v7 }
 0x1fb   :  { %426 = vmatpush1.bf16.msra.mxu0 %v824_v8 }
 0x1fc   :  { %427 = vmatprep.subr.bf16.mxu0 %v831_v9 }
 0x1ff   :  { %428 = vmatpush1.bf16.msra.mxu0 %v838_v10 }
 0x200   :  { %429 = vmatprep.subr.bf16.mxu0 %v845_v11 }
 0x203   :  { %430 = vmatpush1.bf16.msra.mxu0 %v852_v12 }
 0x204   :  { %431 = vmatprep.subr.bf16.mxu0 %v859_v13 }
 0x207   :  { %432 = vmatpush1.bf16.msra.mxu0 %v866_v14 }
 0x208   :  { %433 = vmatprep.subr.bf16.mxu0 %v873_v15 }
 0x20b   :  { %434 = vmatpush1.bf16.msra.mxu0 %v880_v16 }
 0x20c   :  { %435 = vmatprep.subr.bf16.mxu0 %v887_v17 }
 0x20f   :  { %436 = vmatpush2.bf16.msra.mxu0 %v894_v18 }
 0x210   :  { %437 = vmatprep.subr.bf16.mxu0 %v901_v19 }
 0x213   :  { %438 = vmatpush2.bf16.msra.mxu0 %v908_v20 }
 0x214   :  { %439 = vmatprep.subr.bf16.mxu0 %v915_v21 }
 0x217   :  { %440 = vmatpush2.bf16.msra.mxu0 %v922_v22 }
 0x218   :  { %441 = vmatprep.subr.bf16.mxu0 %v929_v23 }
 0x21b   :  { %442 = vmatpush2.bf16.msra.mxu0 %v936_v24 }
 0x21c   :  { %443 = vmatprep.subr.bf16.mxu0 %v946_v26 }
 0x21f   :  { %444 = vmatpush2.bf16.msra.mxu0 %v953_v27 }
 0x220   :  { %445 = vmatprep.subr.bf16.mxu0 %v960_v28 }
 0x223   :  { %446 = vmatpush2.bf16.msra.mxu0 %v967_v29 }
 0x224   :  { %447 = vmatprep.subr.bf16.mxu0 %v974_v30 }
 0x227   :  { %448 = vmatpush2.bf16.msra.mxu0 %v981_v31 }
 0x228   :  { %449 = vmatprep.subr.bf16.mxu0 %v988_v32 }
 0x22b   :  { %450 = vmatpush2.bf16.msra.mxu0 %v995_v34 }
 0x22c   :  { %519 = vmatprep.subr.bf16.mxu0 %v778_v0 }
 0x2ae   :  { %v353_v61 = vpop.f32.mrf.mxu0 }
 0x2af   :  { %v354_v63 = vadd.f32 %v655_v60, %v353_v61 }
 0x2b0   :  { %v355_v1 = vpop.f32.mrf.mxu0 }
 0x2b1   :  { %v356_v25 = vadd.f32 %v656_v62, %v355_v1  ;;  %732 = vtanh.f32 %v354_v63 }
 0x2b2   :  { %v357_v33 = vpop.f32.mrf.mxu0 }
 0x2b3   :  { %734 = vtanh.f32 %v356_v25 }
 0x2b4   :  { %v358_v35 = vpop.f32.mrf.mxu0 }
 0x2be   :  { %v733_v36 = vpop.eup %732 }
 0x2bf   :  { %v364_v39 = vpack.c.bf16 %v733_v36, %v733_v36 }
 0x2c0   :  { %v735_v37 = vpop.eup %734 }
 0x2c1   :  { %657 = vst [vmem:[%s1266_s3 + $0x10] sm:$0xff] %v735_v37  ;;  %v365_v38 = vpack.c.bf16 %v735_v37, %v735_v37 }
 0x2c3   :  { %401 = vmatprep.mubr.bf16.mxu1 %v365_v38 }
 0x2c4   :  { %402 = vmatmul.mubr.bf16.vlgmr.msra.gmra.mxu1 %v364_v39 }
 0x2c5   :  { %470 = vmatpush1.bf16.msra.mxu1 %v783_v2 }
 0x2c6   :  { %471 = vmatprep.subr.bf16.mxu1 %v789_v3 }
 0x2c9   :  { %472 = vmatpush1.bf16.msra.mxu1 %v796_v4 }
 0x2ca   :  { %473 = vmatprep.subr.bf16.mxu1 %v803_v5 }
 0x2cd   :  { %474 = vmatpush1.bf16.msra.mxu1 %v810_v6 }
 0x2ce   :  { %475 = vmatprep.subr.bf16.mxu1 %v817_v7 }
 0x2d1   :  { %476 = vmatpush1.bf16.msra.mxu1 %v824_v8 }
 0x2d2   :  { %477 = vmatprep.subr.bf16.mxu1 %v831_v9 }
 0x2d5   :  { %478 = vmatpush1.bf16.msra.mxu1 %v838_v10 }
 0x2d6   :  { %479 = vmatprep.subr.bf16.mxu1 %v845_v11 }
 0x2d9   :  { %480 = vmatpush1.bf16.msra.mxu1 %v852_v12 }
 0x2da   :  { %481 = vmatprep.subr.bf16.mxu1 %v859_v13 }
 0x2dd   :  { %482 = vmatpush1.bf16.msra.mxu1 %v866_v14 }
 0x2de   :  { %483 = vmatprep.subr.bf16.mxu1 %v873_v15 }
 0x2e1   :  { %484 = vmatpush1.bf16.msra.mxu1 %v880_v16 }
 0x2e2   :  { %485 = vmatprep.subr.bf16.mxu1 %v887_v17 }
 0x2e5   :  { %486 = vmatpush2.bf16.msra.mxu1 %v894_v18 }
 0x2e6   :  { %487 = vmatprep.subr.bf16.mxu1 %v901_v19 }
 0x2e9   :  { %488 = vmatpush2.bf16.msra.mxu1 %v908_v20 }
 0x2ea   :  { %489 = vmatprep.subr.bf16.mxu1 %v915_v21 }
 0x2ed   :  { %490 = vmatpush2.bf16.msra.mxu1 %v922_v22 }
 0x2ee   :  { %491 = vmatprep.subr.bf16.mxu1 %v929_v23 }
 0x2f1   :  { %492 = vmatpush2.bf16.msra.mxu1 %v936_v24 }
 0x2f2   :  { %493 = vmatprep.subr.bf16.mxu1 %v946_v26 }
 0x2f5   :  { %494 = vmatpush2.bf16.msra.mxu1 %v953_v27 }
 0x2f6   :  { %495 = vmatprep.subr.bf16.mxu1 %v960_v28 }
 0x2f9   :  { %496 = vmatpush2.bf16.msra.mxu1 %v967_v29 }
 0x2fa   :  { %497 = vmatprep.subr.bf16.mxu1 %v974_v30 }
 0x2fd   :  { %498 = vmatpush2.bf16.msra.mxu1 %v981_v31 }
 0x2fe   :  { %499 = vmatprep.subr.bf16.mxu1 %v988_v32 }
 0x301   :  { %500 = vmatpush2.bf16.msra.mxu1 %v995_v34 }
 0x302   :  { %569 = vmatprep.subr.bf16.mxu1 %v778_v0 }
 0x384   :  { %v403_v41 = vpop.f32.mrf.mxu1 }
 0x385   :  { %v404_v43 = vadd.f32 %v658_v40, %v403_v41 }
 0x386   :  { %v405_v44 = vpop.f32.mrf.mxu1 }
 0x387   :  { %v406_v45 = vadd.f32 %v659_v42, %v405_v44  ;;  %736 = vtanh.f32 %v404_v43 }
 0x388   :  { %v407_v46 = vpop.f32.mrf.mxu1 }
 0x389   :  { %738 = vtanh.f32 %v406_v45 }
 0x38a   :  { %v408_v47 = vpop.f32.mrf.mxu1 }
 0x394   :  { %v737_v48 = vpop.eup %736 }
 0x395   :  { %v414_v50 = vpack.c.bf16 %v737_v48, %v737_v48 }
 0x396   :  { %v739_v49 = vpop.eup %738 }
 0x397   :  { %660 = vst [vmem:[%s1266_s3 + $0x18] sm:$0xff] %v739_v49  ;;  %v415_v0 = vpack.c.bf16 %v739_v49, %v739_v49 }
 0x399   :  { %451 = vmatprep.mubr.bf16.mxu0 %v415_v0 }
 0x39a   :  { %452 = vmatmul.mubr.bf16.vlgmr.msra.gmra.mxu0 %v414_v50 }
 0x39b   :  { %520 = vmatpush1.bf16.msra.mxu0 %v783_v2 }
 0x39c   :  { %521 = vmatprep.subr.bf16.mxu0 %v789_v3 }
 0x39f   :  { %522 = vmatpush1.bf16.msra.mxu0 %v796_v4 }
 0x3a0   :  { %523 = vmatprep.subr.bf16.mxu0 %v803_v5 }
 0x3a3   :  { %524 = vmatpush1.bf16.msra.mxu0 %v810_v6 }
 0x3a4   :  { %525 = vmatprep.subr.bf16.mxu0 %v817_v7 }
 0x3a7   :  { %526 = vmatpush1.bf16.msra.mxu0 %v824_v8 }
 0x3a8   :  { %527 = vmatprep.subr.bf16.mxu0 %v831_v9 }
 0x3ab   :  { %528 = vmatpush1.bf16.msra.mxu0 %v838_v10 }
 0x3ac   :  { %529 = vmatprep.subr.bf16.mxu0 %v845_v11 }
 0x3af   :  { %530 = vmatpush1.bf16.msra.mxu0 %v852_v12 }
 0x3b0   :  { %531 = vmatprep.subr.bf16.mxu0 %v859_v13 }
 0x3b3   :  { %532 = vmatpush1.bf16.msra.mxu0 %v866_v14 }
 0x3b4   :  { %533 = vmatprep.subr.bf16.mxu0 %v873_v15 }
 0x3b7   :  { %534 = vmatpush1.bf16.msra.mxu0 %v880_v16 }
 0x3b8   :  { %535 = vmatprep.subr.bf16.mxu0 %v887_v17 }
 0x3bb   :  { %536 = vmatpush2.bf16.msra.mxu0 %v894_v18 }
 0x3bc   :  { %537 = vmatprep.subr.bf16.mxu0 %v901_v19 }
 0x3bf   :  { %538 = vmatpush2.bf16.msra.mxu0 %v908_v20 }
 0x3c0   :  { %539 = vmatprep.subr.bf16.mxu0 %v915_v21 }
 0x3c3   :  { %540 = vmatpush2.bf16.msra.mxu0 %v922_v22 }
 0x3c4   :  { %541 = vmatprep.subr.bf16.mxu0 %v929_v23 }
 0x3c7   :  { %542 = vmatpush2.bf16.msra.mxu0 %v936_v24 }
 0x3c8   :  { %543 = vmatprep.subr.bf16.mxu0 %v946_v26 }
 0x3cb   :  { %544 = vmatpush2.bf16.msra.mxu0 %v953_v27 }
 0x3cc   :  { %545 = vmatprep.subr.bf16.mxu0 %v960_v28 }
 0x3cf   :  { %546 = vmatpush2.bf16.msra.mxu0 %v967_v29 }
 0x3d0   :  { %547 = vmatprep.subr.bf16.mxu0 %v974_v30 }
 0x3d3   :  { %548 = vmatpush2.bf16.msra.mxu0 %v981_v31 }
 0x3d4   :  { %549 = vmatprep.subr.bf16.mxu0 %v988_v32 }
 0x3d7   :  { %550 = vmatpush2.bf16.msra.mxu0 %v995_v34 }
 0x45a   :  { %v453_v52 = vpop.f32.mrf.mxu0 }
 0x45b   :  { %v454_v54 = vadd.f32 %v661_v51, %v453_v52 }
 0x45c   :  { %v455_v55 = vpop.f32.mrf.mxu0 }
 0x45d   :  { %v456_v56 = vadd.f32 %v662_v53, %v455_v55  ;;  %740 = vtanh.f32 %v454_v54 }
 0x45e   :  { %v457_v57 = vpop.f32.mrf.mxu0 }
 0x45f   :  { %742 = vtanh.f32 %v456_v56 }
 0x460   :  { %v458_v58 = vpop.f32.mrf.mxu0 }
 0x46a   :  { %v741_v59 = vpop.eup %740 }
 0x46b   :  { %v464_v62 = vpack.c.bf16 %v741_v59, %v741_v59 }
 0x46c   :  { %v743_v60 = vpop.eup %742 }
 0x46d   :  { %663 = vst [vmem:[%s1266_s3 + $0x20] sm:$0xff] %v743_v60  ;;  %v465_v61 = vpack.c.bf16 %v743_v60, %v743_v60 }
 0x46f   :  { %501 = vmatprep.mubr.bf16.mxu1 %v465_v61 }
 0x470   :  { %502 = vmatmul.mubr.bf16.vlgmr.msra.gmra.mxu1 %v464_v62 }
 0x471   :  { %570 = vmatpush1.bf16.msra.mxu1 %v783_v2  ;;  %v664_v2 = vld [vmem:[%s1265_s1 + $0x50] sm:$0xff] }
 0x472   :  { %571 = vmatprep.subr.bf16.mxu1 %v789_v3 }
 0x475   :  { %572 = vmatpush1.bf16.msra.mxu1 %v796_v4  ;;  %v665_v4 = vld [vmem:[%s1265_s1 + $0x58] sm:$0xff] }
 0x476   :  { %573 = vmatprep.subr.bf16.mxu1 %v803_v5 }
 0x479   :  { %574 = vmatpush1.bf16.msra.mxu1 %v810_v6 }
 0x47a   :  { %575 = vmatprep.subr.bf16.mxu1 %v817_v7 }
 0x47d   :  { %576 = vmatpush1.bf16.msra.mxu1 %v824_v8 }
 0x47e   :  { %577 = vmatprep.subr.bf16.mxu1 %v831_v9 }
 0x481   :  { %578 = vmatpush1.bf16.msra.mxu1 %v838_v10 }
 0x482   :  { %579 = vmatprep.subr.bf16.mxu1 %v845_v11 }
 0x485   :  { %580 = vmatpush1.bf16.msra.mxu1 %v852_v12 }
 0x486   :  { %581 = vmatprep.subr.bf16.mxu1 %v859_v13 }
 0x489   :  { %582 = vmatpush1.bf16.msra.mxu1 %v866_v14  ;;  %v667_v14 = vld [vmem:[%s1265_s1 + $0x60] sm:$0xff] }
 0x48a   :  { %583 = vmatprep.subr.bf16.mxu1 %v873_v15 }
 0x48d   :  { %584 = vmatpush1.bf16.msra.mxu1 %v880_v16  ;;  %v668_v16 = vld [vmem:[%s1265_s1 + $0x68] sm:$0xff] }
 0x48e   :  { %585 = vmatprep.subr.bf16.mxu1 %v887_v17 }
 0x491   :  { %586 = vmatpush2.bf16.msra.mxu1 %v894_v18 }
 0x492   :  { %587 = vmatprep.subr.bf16.mxu1 %v901_v19 }
 0x495   :  { %588 = vmatpush2.bf16.msra.mxu1 %v908_v20 }
 0x496   :  { %589 = vmatprep.subr.bf16.mxu1 %v915_v21 }
 0x499   :  { %590 = vmatpush2.bf16.msra.mxu1 %v922_v22 }
 0x49a   :  { %591 = vmatprep.subr.bf16.mxu1 %v929_v23 }
 0x49d   :  { %592 = vmatpush2.bf16.msra.mxu1 %v936_v24 }
 0x49e   :  { %593 = vmatprep.subr.bf16.mxu1 %v946_v26 }
 0x4a1   :  { %594 = vmatpush2.bf16.msra.mxu1 %v953_v27 }
 0x4a2   :  { %595 = vmatprep.subr.bf16.mxu1 %v960_v28  ;;  %v671_v28 = vld [vmem:[%s1265_s1 + $0x78] sm:$0xff] }
 0x4a5   :  { %596 = vmatpush2.bf16.msra.mxu1 %v967_v29 }
 0x4a6   :  { %597 = vmatprep.subr.bf16.mxu1 %v974_v30 }
 0x4a9   :  { %598 = vmatpush2.bf16.msra.mxu1 %v981_v31 }
 0x4aa   :  { %599 = vmatprep.subr.bf16.mxu1 %v988_v32 }
 0x4ad   :  { %600 = vmatpush2.bf16.msra.mxu1 %v995_v34 }
 0x530   :  { %v503_v3 = vpop.f32.mrf.mxu1 }
 0x531   :  { %v504_v5 = vadd.f32 %v664_v2, %v503_v3 }
 0x532   :  { %v505_v6 = vpop.f32.mrf.mxu1 }
 0x533   :  { %v506_v7 = vadd.f32 %v665_v4, %v505_v6  ;;  %744 = vtanh.f32 %v504_v5 }
 0x534   :  { %v507_v8 = vpop.f32.mrf.mxu1 }
 0x535   :  { %746 = vtanh.f32 %v506_v7 }
 0x536   :  { %v508_v9 = vpop.f32.mrf.mxu1 }
 0x540   :  { %v745_v10 = vpop.eup %744 }
 0x541   :  { %v514_v13 = vpack.c.bf16 %v745_v10, %v745_v10 }
 0x542   :  { %v747_v11 = vpop.eup %746 }
 0x543   :  { %666 = vst [vmem:[%s1266_s3 + $0x28] sm:$0xff] %v747_v11  ;;  %v515_v12 = vpack.c.bf16 %v747_v11, %v747_v11 }
 0x545   :  { %551 = vmatprep.mubr.bf16.mxu0 %v515_v12 }
 0x546   :  { %552 = vmatmul.mubr.bf16.vlgmr.msra.gmra.mxu0 %v514_v13 }
 0x606   :  { %v553_v15 = vpop.f32.mrf.mxu0 }
 0x607   :  { %v554_v17 = vadd.f32 %v667_v14, %v553_v15 }
 0x608   :  { %v555_v18 = vpop.f32.mrf.mxu0 }
 0x609   :  { %v556_v19 = vadd.f32 %v668_v16, %v555_v18  ;;  %748 = vtanh.f32 %v554_v17 }
 0x60a   :  { %v557_v20 = vpop.f32.mrf.mxu0 }
 0x60b   :  { %750 = vtanh.f32 %v556_v19 }
 0x60c   :  { %v558_v21 = vpop.f32.mrf.mxu0 }
 0x616   :  { %v749_v22 = vpop.eup %748 }
 0x617   :  { %v564_v26 = vpack.c.bf16 %v749_v22, %v749_v22 }
 0x618   :  { %v751_v23 = vpop.eup %750 }
 0x619   :  { %669 = vst [vmem:[%s1266_s3 + $0x30] sm:$0xff] %v751_v23  ;;  %v565_v24 = vpack.c.bf16 %v751_v23, %v751_v23 }
 0x61b   :  { %601 = vmatprep.mubr.bf16.mxu1 %v565_v24 }
 0x61c   :  { %602 = vmatmul.mubr.bf16.vlgmr.msra.gmra.mxu1 %v564_v26 }
 0x6dc   :  { %v603_v27 = vpop.f32.mrf.mxu1 }
 0x6de   :  { %v605_v29 = vpop.f32.mrf.mxu1 }
 0x6df   :  { %v606_v30 = vadd.f32 %v671_v28, %v605_v29 }
 0x6e0   :  { %v607_v31 = vpop.f32.mrf.mxu1 }
 0x6e1   :  { %752 = vtanh.f32 %v606_v30 }
 0x6e2   :  { %v608_v32 = vpop.f32.mrf.mxu1 }
 0x6ee   :  { %v753_v34 = vpop.eup %752 }
 0x6ef   :  { %672 = vst [vmem:[%s1266_s3 + $0x38] sm:$0xff] %v753_v34 }

</bundles_post_ra>
